<compile_context>
chip_gen: v7x
topology: tpu7x:2x2x1
jax: 0.10.0
libtpu: 0.0.40
codegen_flags: <defaults>
</compile_context>

<pallas_src>
import jax
import jax.numpy as jnp
from jax.experimental import pallas as pl
from jax.experimental.pallas import tpu as pltpu


def _round_up(n, m):
    return ((n + m - 1) // m) * m


def _mlp_fused_kernel(x_ref, w1_ref, w2_ref, w3_ref, b_ref, o_ref):
    # x_ref : (TB, 392) f32   rows are [x1 | x2] (cast to weight dtype in-kernel)
    # w1_ref: (392, H2p)      blockdiag(W1_1, W1_2), zero-padded to H2p lanes
    # w2_ref: (H2p, H2p)      blockdiag(W2_1, W2_2), zero-padded
    # w3_ref: (H2p, 8)        W3 in [:2h, :2], zero-padded (narrow, lane-masked output)
    # b_ref : (3, H2p) f32    bias rows: layer1, layer2, layer3 (layer3 uses lanes [:8])
    # o_ref : (TB, 8)  f32    logits live in columns [:2]
    wdt = w1_ref.dtype
    x = x_ref[...].astype(wdt)          # in-kernel cast; no extra HBM pass
    b = b_ref[...]
    b1 = b[0:1, :]
    b2 = b[1:2, :]
    b3 = b[2:3, :8]

    # layer 1 (both branches fused in one dot) + ReLU; f32 accumulation on the MXU
    h = jnp.dot(x, w1_ref[...], preferred_element_type=jnp.float32) + b1
    h = jnp.maximum(h, 0.0)

    # layer 2 (both branches fused) + ReLU
    g = jnp.dot(h.astype(wdt), w2_ref[...], preferred_element_type=jnp.float32) + b2
    g = jnp.maximum(g, 0.0)

    # final linear: g is already [g1 | g2 | 0-pad], so no concat is needed
    o_ref[...] = jnp.dot(g.astype(wdt), w3_ref[...],
                         preferred_element_type=jnp.float32) + b3


def pack_params(params, hidden, compute_dtype=jnp.bfloat16):
    """Pack per-branch weights into block-diagonal, lane-padded matrices (done once)."""
    (w11, b11, w12, b12, w21, b21, w22, b22, w3, b3) = params
    H2 = 2 * hidden
    H2p = _round_up(max(H2, 128), 128)   # packed hidden width, lane-dense (>=128)

    w1p = jnp.zeros((392, H2p), compute_dtype)
    w1p = w1p.at[:196, :hidden].set(w11.astype(compute_dtype))
    w1p = w1p.at[196:, hidden:H2].set(w12.astype(compute_dtype))

    w2p = jnp.zeros((H2p, H2p), compute_dtype)
    w2p = w2p.at[:hidden, :hidden].set(w21.astype(compute_dtype))
    w2p = w2p.at[hidden:H2, hidden:H2].set(w22.astype(compute_dtype))

    # Only 8 output lanes: shrinks HBM writeback 16x vs a 128-lane output.
    w3p = jnp.zeros((H2p, 8), compute_dtype)
    w3p = w3p.at[:H2, :2].set(w3.astype(compute_dtype))

    bp = jnp.zeros((3, H2p), jnp.float32)
    bp = bp.at[0, :hidden].set(b11.reshape(-1))
    bp = bp.at[0, hidden:H2].set(b12.reshape(-1))
    bp = bp.at[1, :hidden].set(b21.reshape(-1))
    bp = bp.at[1, hidden:H2].set(b22.reshape(-1))
    bp = bp.at[2, :2].set(b3.reshape(-1))

    return (w1p, w2p, w3p, bp)


def _choose_tile(B, block_b, *, align=16, min_steps=2, max_tb=4096):
    """Pick (TB, Bp).  Big tiles to amortize per-step overhead, but >=2 grid steps
    when the batch allows it (so v7x's two TensorCores both get work), and capped so
    double-buffered f32 tiles stay well under the 32 MiB scoped-VMEM default."""
    Bp_min = _round_up(max(B, 1), align)
    TB = min(_round_up(block_b, align), Bp_min, max_tb)
    if Bp_min >= min_steps * align:
        per_core = _round_up(-(-Bp_min // min_steps), align)
        TB = min(TB, per_core)
    TB = max(TB, align)
    Bp = _round_up(B, TB)
    return TB, Bp


def mlp_nosharing_noaux(x, packed, *, block_b=2048):
    """x: [B, 2, 14, 14] float32.  packed: output of pack_params.  Returns [B, 2] f32."""
    w1p, w2p, w3p, bp = packed
    B = x.shape[0]
    assert x.shape[1:] == (2, 14, 14)
    H2p = w2p.shape[0]

    # Single contiguous reshape: NCHW [B,2,14,14] -> [B, 392] = [x1 | x2] per row.
    # x stays f32 into the kernel (no wrapper-side convert pass).
    x_flat = x.reshape(B, 392)

    TB, Bp = _choose_tile(B, block_b)
    if Bp != B:
        x_flat = jnp.pad(x_flat, ((0, Bp - B), (0, 0)))
    grid = (Bp // TB,)

    flops = 2 * Bp * (392 * H2p + H2p * H2p + H2p * 8)
    bytes_accessed = (
        x_flat.size * x_flat.dtype.itemsize          # input read
        + Bp * 8 * 4                                 # output write
        + sum(a.size * a.dtype.itemsize for a in (w1p, w2p, w3p, bp))
    )

    const = lambda i: (0, 0)  # weights/biases stay resident in VMEM across grid steps
    out = pl.pallas_call(
        _mlp_fused_kernel,
        out_shape=jax.ShapeDtypeStruct((Bp, 8), jnp.float32),
        grid=grid,
        in_specs=[
            pl.BlockSpec((TB, 392), lambda i: (i, 0)),
            pl.BlockSpec(w1p.shape, const),
            pl.BlockSpec(w2p.shape, const),
            pl.BlockSpec(w3p.shape, const),
            pl.BlockSpec(bp.shape, const),
        ],
        out_specs=pl.BlockSpec((TB, 8), lambda i: (i, 0)),
        compiler_params=pltpu.CompilerParams(
            dimension_semantics=("parallel",),  # shard batch grid across TCs (v7x)
        ),
        cost_estimate=pl.CostEstimate(flops=flops, transcendentals=0,
                                      bytes_accessed=bytes_accessed),
    )(x_flat, w1p, w2p, w3p, bp)

    return out[:B, :2]


def init_params(key, hidden):
    """Deterministic init mimicking torch.nn.Linear default U(-1/sqrt(fan_in), +...).

    Weights stored as [in, out]; biases stored as [1, out]."""
    def linear(key, fan_in, fan_out):
        kw, kb = jax.random.split(key)
        bound = 1.0 / jnp.sqrt(fan_in)
        w = jax.random.uniform(kw, (fan_in, fan_out), jnp.float32, -bound, bound)
        b = jax.random.uniform(kb, (1, fan_out), jnp.float32, -bound, bound)
        return w, b

    k1, k2, k3, k4, k5 = jax.random.split(key, 5)
    w11, b11 = linear(k1, 196, hidden)
    w12, b12 = linear(k2, 196, hidden)
    w21, b21 = linear(k3, hidden, hidden)
    w22, b22 = linear(k4, hidden, hidden)
    w3, b3 = linear(k5, hidden * 2, 2)
    return (w11, b11, w12, b12, w21, b21, w22, b22, w3, b3)


def _reference(x, params):
    (w11, b11, w12, b12, w21, b21, w22, b22, w3, b3) = params
    B = x.shape[0]
    x1 = x[:, 0, :, :].reshape(B, 196)
    x2 = x[:, 1, :, :].reshape(B, 196)
    h1 = jax.nn.relu(x1 @ w11 + b11)
    h2 = jax.nn.relu(x2 @ w12 + b12)
    g1 = jax.nn.relu(h1 @ w21 + b21)
    g2 = jax.nn.relu(h2 @ w22 + b22)
    return jnp.concatenate([g1, g2], axis=1) @ w3 + b3


if __name__ == "__main__":
    key = jax.random.PRNGKey(0)
    kx, kp = jax.random.split(key)

    hidden = 32
    params = init_params(kp, hidden)

    # ---- f32 weight path, small batch (single grid step), tight tolerance ----
    B = 2
    x = jax.random.normal(kx, (B, 2, 14, 14), jnp.float32)
    packed_f32 = pack_params(params, hidden, jnp.float32)
    out = jax.block_until_ready(mlp_nosharing_noaux(x, packed_f32))
    ref = _reference(x, params)
    assert out.shape == (B, 2)
    assert jnp.allclose(out, ref, atol=1e-5, rtol=1e-5)

    # ---- bf16 weights (f32 accumulation), explicit small tile -> multi-step grid ----
    B2 = 200
    x2 = jax.random.normal(jax.random.PRNGKey(1), (B2, 2, 14, 14), jnp.float32)
    packed_bf16 = pack_params(params, hidden, jnp.bfloat16)
    out2 = jax.block_until_ready(mlp_nosharing_noaux(x2, packed_bf16, block_b=64))
    ref2 = _reference(x2, params)
    assert out2.shape == (B2, 2)
    assert jnp.allclose(out2, ref2, atol=1e-1, rtol=5e-2)

    # ---- bf16 weights, default block_b: exercises the >=2-step megacore split ----
    out3 = jax.block_until_ready(mlp_nosharing_noaux(x2, packed_bf16))
    assert out3.shape == (B2, 2)
    assert jnp.allclose(out3, ref2, atol=1e-1, rtol=5e-2)

    print("KERNEL_OK")
</pallas_src>

<mosaic_0001>
module attributes {stable_mosaic.version = 11 : i64} {
  func.func @_mlp_fused_kernel(%arg0: i32, %arg1: memref<16x392xf32, #tpu.memory_space<vmem>>, %arg2: memref<392x128xf32, #tpu.memory_space<vmem>>, %arg3: memref<128x128xf32, #tpu.memory_space<vmem>>, %arg4: memref<128x8xf32, #tpu.memory_space<vmem>>, %arg5: memref<3x128xf32, #tpu.memory_space<vmem>>, %arg6: memref<16x8xf32, #tpu.memory_space<vmem>>) attributes {dimension_semantics = [#tpu.dimension_semantics<parallel>], iteration_bounds = array<i64: 1>, scalar_prefetch = 0 : i64, scratch_operands = 0 : i64, tpu.core_type = #tpu.core_type<tc>, window_params = [{transform_indices = @transform_0, window_bounds = array<i64: 16, 392>}, {pipeline_mode = #tpu.pipeline_mode<synchronous>, transform_indices = @transform_1, window_bounds = array<i64: 392, 128>}, {pipeline_mode = #tpu.pipeline_mode<synchronous>, transform_indices = @transform_2, window_bounds = array<i64: 128, 128>}, {pipeline_mode = #tpu.pipeline_mode<synchronous>, transform_indices = @transform_3, window_bounds = array<i64: 128, 8>}, {pipeline_mode = #tpu.pipeline_mode<synchronous>, transform_indices = @transform_4, window_bounds = array<i64: 3, 128>}, {transform_indices = @transform_5, window_bounds = array<i64: 16, 8>}]} {
    %c0 = arith.constant 0 : index
    %c0_0 = arith.constant 0 : index
    %0 = vector.load %arg1[%c0, %c0_0] : memref<16x392xf32, #tpu.memory_space<vmem>>, vector<16x392xf32>
    %c0_1 = arith.constant 0 : index
    %c0_2 = arith.constant 0 : index
    %1 = vector.load %arg5[%c0_1, %c0_2] : memref<3x128xf32, #tpu.memory_space<vmem>>, vector<3x128xf32>
    %2 = vector.extract_strided_slice %1 {offsets = [0, 0], sizes = [1, 128], strides = [1, 1]} : vector<3x128xf32> to vector<1x128xf32>
    %3 = vector.extract_strided_slice %1 {offsets = [1, 0], sizes = [1, 128], strides = [1, 1]} : vector<3x128xf32> to vector<1x128xf32>
    %4 = vector.extract_strided_slice %1 {offsets = [2, 0], sizes = [1, 8], strides = [1, 1]} : vector<3x128xf32> to vector<1x8xf32>
    %c0_3 = arith.constant 0 : index
    %c0_4 = arith.constant 0 : index
    %5 = vector.load %arg2[%c0_3, %c0_4] : memref<392x128xf32, #tpu.memory_space<vmem>>, vector<392x128xf32>
    %cst = arith.constant dense<0.000000e+00> : vector<16x128xf32>
    %6 = tpu.matmul %0, %5, %cst {dimension_numbers = #tpu.dot_dimension_numbers<[1], [0], [0], [1], [0, 0, 1, 1], [], []>} : vector<16x392xf32>, vector<392x128xf32>, vector<16x128xf32> -> vector<16x128xf32>
    %7 = vector.broadcast %2 : vector<1x128xf32> to vector<16x128xf32>
    %8 = arith.addf %6, %7 : vector<16x128xf32>
    %cst_5 = arith.constant 0.000000e+00 : f32
    %9 = vector.broadcast %cst_5 : f32 to vector<16x128xf32>
    %10 = arith.maximumf %8, %9 : vector<16x128xf32>
    %c0_6 = arith.constant 0 : index
    %c0_7 = arith.constant 0 : index
    %11 = vector.load %arg3[%c0_6, %c0_7] : memref<128x128xf32, #tpu.memory_space<vmem>>, vector<128x128xf32>
    %cst_8 = arith.constant dense<0.000000e+00> : vector<16x128xf32>
    %12 = tpu.matmul %10, %11, %cst_8 {dimension_numbers = #tpu.dot_dimension_numbers<[1], [0], [0], [1], [0, 0, 1, 1], [], []>} : vector<16x128xf32>, vector<128x128xf32>, vector<16x128xf32> -> vector<16x128xf32>
    %13 = vector.broadcast %3 : vector<1x128xf32> to vector<16x128xf32>
    %14 = arith.addf %12, %13 : vector<16x128xf32>
    %cst_9 = arith.constant 0.000000e+00 : f32
    %15 = vector.broadcast %cst_9 : f32 to vector<16x128xf32>
    %16 = arith.maximumf %14, %15 : vector<16x128xf32>
    %c0_10 = arith.constant 0 : index
    %c0_11 = arith.constant 0 : index
    %17 = vector.load %arg4[%c0_10, %c0_11] : memref<128x8xf32, #tpu.memory_space<vmem>>, vector<128x8xf32>
    %cst_12 = arith.constant dense<0.000000e+00> : vector<16x8xf32>
    %18 = tpu.matmul %16, %17, %cst_12 {dimension_numbers = #tpu.dot_dimension_numbers<[1], [0], [0], [1], [0, 0, 1, 1], [], []>} : vector<16x128xf32>, vector<128x8xf32>, vector<16x8xf32> -> vector<16x8xf32>
    %19 = vector.broadcast %4 : vector<1x8xf32> to vector<16x8xf32>
    %20 = arith.addf %18, %19 : vector<16x8xf32>
    %c0_13 = arith.constant 0 : index
    %c0_14 = arith.constant 0 : index
    %21 = vector.load %arg6[%c0_13, %c0_14] : memref<16x8xf32, #tpu.memory_space<vmem>>, vector<16x8xf32>
    tpu.vector_store %arg6[%c0_13, %c0_14], %20 {strides = array<i32>} : memref<16x8xf32, #tpu.memory_space<vmem>>, vector<16x8xf32>,
    return
  }
  func.func @transform_0(%arg0: i32) -> (i32, i32) {
    %c0_i32 = arith.constant 0 : i32
    %c0_i32_0 = arith.constant 0 : i32
    return %arg0, %c0_i32 : i32, i32
  }
  func.func @transform_1(%arg0: i32) -> (i32, i32) {
    %c0_i32 = arith.constant 0 : i32
    %c0_i32_0 = arith.constant 0 : i32
    %c0_i32_1 = arith.constant 0 : i32
    return %c0_i32, %c0_i32_0 : i32, i32
  }
  func.func @transform_2(%arg0: i32) -> (i32, i32) {
    %c0_i32 = arith.constant 0 : i32
    %c0_i32_0 = arith.constant 0 : i32
    %c0_i32_1 = arith.constant 0 : i32
    return %c0_i32, %c0_i32_0 : i32, i32
  }
  func.func @transform_3(%arg0: i32) -> (i32, i32) {
    %c0_i32 = arith.constant 0 : i32
    %c0_i32_0 = arith.constant 0 : i32
    %c0_i32_1 = arith.constant 0 : i32
    return %c0_i32, %c0_i32_0 : i32, i32
  }
  func.func @transform_4(%arg0: i32) -> (i32, i32) {
    %c0_i32 = arith.constant 0 : i32
    %c0_i32_0 = arith.constant 0 : i32
    %c0_i32_1 = arith.constant 0 : i32
    return %c0_i32, %c0_i32_0 : i32, i32
  }
  func.func @transform_5(%arg0: i32) -> (i32, i32) {
    %c0_i32 = arith.constant 0 : i32
    %c0_i32_0 = arith.constant 0 : i32
    return %arg0, %c0_i32 : i32, i32
  }
}

</mosaic_0001>

<bundles_post_ra>
// kernel: tpu_custom_call.1
= control target key start
LH: loop header
LB: loop body
LE: loop exit
PB: predicated region body
PF: predicated region fallthrough
CT: control target
= control target key end

     0   :  { %10 = vsyncpa [#allocation3], 0  ;;  %s970_s0 = inlined_call_operand.hbm [shape: f32[16,392], index: 0, kind: input, shape index: {}]   ;;  %s971_s1 = inlined_call_operand.hbm [shape: f32[392,128], index: 1, kind: input, shape index: {}]   ;;  %s972_s2 = inlined_call_operand.vmem [shape: f32[128,128], index: 2, kind: input, shape index: {}]   ;;  %s973_s3 = inlined_call_operand.vmem [shape: f32[128,8], index: 3, kind: input, shape index: {}]   ;;  %s974_s4 = inlined_call_operand.vmem [shape: f32[3,128], index: 4, kind: input, shape index: {}]   ;;  %s975_s5 = inlined_call_operand.vmem [shape: f32[16,8], index: 5, kind: output, shape index: {}]  }
   0x1   :  { %11 = vsyncpa [#allocation5], 0  ;;  %s791_s18 = smov [#allocation2]   ;;  %s743_s22 = scalar_lea.hbm %s970_s0, 1024 }
   0x2   :  { %s17_s19 = sshll.u32 %s791_s18, 4  ;;  %p744_p0 = scmp.ne.s32.totalorder %s970_s0, %s743_s22  ;;  %s18_s19 = int_to_ptr.vmem [resolvable:$true] %s17_s19 }
   0x3   :  { %p747_p1 = scmp.lt.u32.totalorder %s743_s22, %s970_s0 }
   0x5   :  { %p749_p2 = pnand %p747_p1, %p744_p0 }
   0x7   :  { %752 = shalt.err (!%p749_p2)
}
   0x8   :  { %s753_s27 = scalar_lea.vmem %s18_s19, 1024  ;;  %p758_p4 = scmp.lt.s32.totalorder %s18_s19, %s18_s19 }
   0x9   :  { %p754_p3 = scmp.ne.s32.totalorder %s18_s19, %s753_s27  ;;  %p759_p5 = scmp.lt.s32.totalorder %s753_s27, %s753_s27 }
   0xb   :  { %p760_p6 = por %p759_p5, %p758_p4 }
   0xd   :  { %p761_p7 = pnand %p760_p6, %p754_p3 }
   0xf   :  { %764 = shalt.err (!%p761_p7)
}
  0x10   :  { %s792_s28 = smov 512   ;;  %s793_s29 = smov 32  }
  0x11   :  { %23 = dma.hbm_to_vmem [thread:$0]  %s970_s0, 1024, %s18_s19, [#allocation3], %s792_s28, %s792_s28, %s793_s29  }
  0x12   :  { %s794_s7 = smov [#allocation4]   ;;  %s765_s11 = scalar_lea.hbm %s971_s1, 6272 }
  0x13   :  { %s29_s8 = sshll.u32 %s794_s7, 4  ;;  %p766_p8 = scmp.ne.s32.totalorder %s971_s1, %s765_s11  ;;  %s30_s8 = int_to_ptr.vmem [resolvable:$true] %s29_s8 }
  0x14   :  { %p769_p9 = scmp.lt.u32.totalorder %s765_s11, %s971_s1 }
  0x16   :  { %p771_p10 = pnand %p769_p9, %p766_p8 }
  0x18   :  { %774 = shalt.err (!%p771_p10)
}
  0x19   :  { %s775_s16 = scalar_lea.vmem %s30_s8, 6272  ;;  %p780_p12 = scmp.lt.s32.totalorder %s30_s8, %s30_s8 }
  0x1a   :  { %p776_p11 = scmp.ne.s32.totalorder %s30_s8, %s775_s16  ;;  %p781_p13 = scmp.lt.s32.totalorder %s775_s16, %s775_s16 }
  0x1c   :  { %p782_p0 = por %p781_p13, %p780_p12 }
  0x1e   :  { %p783_p1 = pnand %p782_p0, %p776_p11 }
  0x20   :  { %786 = shalt.err (!%p783_p1)
}
  0x21   :  { %s795_s0 = smov 128   ;;  %s796_s17 = smov 8  }
  0x22   :  { %35 = dma.hbm_to_vmem [thread:$0]  %s971_s1, 6272, %s30_s8, [#allocation5], %s795_s0, %s795_s0, %s796_s17  }
  0x23   :  { %787 = dma.done.wait [#allocation3], 1024  }
  0x24   :  { %788 = vsyncadd [#allocation3], 4294966272 }
  0x25   :  { %789 = dma.done.wait [#allocation5], 6272  }
  0x26   :  { %790 = vsyncadd [#allocation5], 4294961024  ;;  %v797_v0 = vmov 0.0|0.0   ;;  %v73_v1 = vld [vmem:[#allocation4 + $0x80] sm:$0xff]  ;;  %v74_v2 = vld [vmem:[#allocation4 + $0x88] sm:$0xff]  ;;  %vm110_vm0 = vcmask 64512  }
  0x27   :  { %647 = vmatprep.subr.bf16.mxu1 %v797_v0  ;;  %v57_v3 = vld [vmem:[#allocation4] sm:$0xff]  ;;  %v615_v4 = vpack.c.bf16 %v74_v2, %v73_v1  ;;  %v58_v5 = vld [vmem:[#allocation4 + $0x8] sm:$0xff]  ;;  %v75_v10 = vld [vmem:[#allocation4 + $0x90] sm:$0xff] }
  0x28   :  { %v89_v6 = vld [vmem:[#allocation4 + $0x100] sm:$0xff]  ;;  %v90_v7 = vld [vmem:[#allocation4 + $0x108] sm:$0xff]  ;;  %v617_v8 = vpack.c.bf16 %v58_v5, %v57_v3  ;;  %v76_v11 = vld [vmem:[#allocation4 + $0x98] sm:$0xff] }
  0x29   :  { %v648_v9 = vpack.c.bf16 %v90_v7, %v89_v6  ;;  %v59_v12 = vld [vmem:[#allocation4 + $0x10] sm:$0xff]  ;;  %616 = vmatprep.subr.bf16.mxu0 %v615_v4  ;;  %v619_v13 = vpack.c.bf16 %v76_v11, %v75_v10  ;;  %v60_v14 = vld [vmem:[#allocation4 + $0x18] sm:$0xff]  ;;  %v77_v19 = vld [vmem:[#allocation4 + $0xa0] sm:$0xff] }
  0x2a   :  { %v91_v15 = vld [vmem:[#allocation4 + $0x110] sm:$0xff]  ;;  %v92_v16 = vld [vmem:[#allocation4 + $0x118] sm:$0xff]  ;;  %618 = vmatpush3.bf16.msra.mxu0 %v617_v8  ;;  %v621_v17 = vpack.c.bf16 %v60_v14, %v59_v12  ;;  %v78_v20 = vld [vmem:[#allocation4 + $0xa8] sm:$0xff] }
  0x2b   :  { %649 = vmatpush1.bf16.msra.mxu1 %v648_v9  ;;  %v651_v18 = vpack.c.bf16 %v92_v16, %v91_v15  ;;  %v61_v21 = vld [vmem:[#allocation4 + $0x20] sm:$0xff]  ;;  %620 = vmatprep.subr.bf16.mxu0 %v619_v13  ;;  %v623_v22 = vpack.c.bf16 %v78_v20, %v77_v19  ;;  %v62_v23 = vld [vmem:[#allocation4 + $0x28] sm:$0xff]  ;;  %v79_v26 = vld [vmem:[#allocation4 + $0xb0] sm:$0xff] }
  0x2c   :  { %650 = vmatprep.subr.bf16.mxu1 %v797_v0  ;;  %v93_v24 = vld [vmem:[#allocation4 + $0x120] sm:$0xff]  ;;  %v94_v25 = vld [vmem:[#allocation4 + $0x128] sm:$0xff]  ;;  %v80_v27 = vld [vmem:[#allocation4 + $0xb8] sm:$0xff]  ;;  %v625_v28 = vpack.c.bf16 %v62_v23, %v61_v21 }
  0x2d   :  { %v654_v29 = vpack.c.bf16 %v94_v25, %v93_v24  ;;  %v63_v30 = vld [vmem:[#allocation4 + $0x30] sm:$0xff]  ;;  %v627_v31 = vpack.c.bf16 %v80_v27, %v79_v26  ;;  %v64_v32 = vld [vmem:[#allocation4 + $0x38] sm:$0xff]  ;;  %v81_v35 = vld [vmem:[#allocation4 + $0xc0] sm:$0xff] }
  0x2e   :  { %622 = vmatpush3.bf16.msra.mxu0 %v621_v17  ;;  %v95_v33 = vld [vmem:[#allocation4 + $0x130] sm:$0xff]  ;;  %v96_v34 = vld [vmem:[#allocation4 + $0x138] sm:$0xff]  ;;  %v82_v36 = vld [vmem:[#allocation4 + $0xc8] sm:$0xff]  ;;  %v629_v37 = vpack.c.bf16 %v64_v32, %v63_v30 }
  0x2f   :  { %652 = vmatpush1.bf16.msra.mxu1 %v651_v18  ;;  %624 = vmatprep.subr.bf16.mxu0 %v623_v22  ;;  %v657_v38 = vpack.c.bf16 %v96_v34, %v95_v33  ;;  %v65_v39 = vld [vmem:[#allocation4 + $0x40] sm:$0xff]  ;;  %v631_v40 = vpack.c.bf16 %v82_v36, %v81_v35  ;;  %v66_v41 = vld [vmem:[#allocation4 + $0x48] sm:$0xff]  ;;  %v83_v44 = vld [vmem:[#allocation4 + $0xd0] sm:$0xff]  ;;  %v798_v18 = vmov 0.0  }
  0x30   :  { %653 = vmatprep.subr.bf16.mxu1 %v797_v0  ;;  %v97_v42 = vld [vmem:[#allocation4 + $0x140] sm:$0xff]  ;;  %v98_v43 = vld [vmem:[#allocation4 + $0x148] sm:$0xff]  ;;  %v84_v45 = vld [vmem:[#allocation4 + $0xd8] sm:$0xff]  ;;  %v633_v47 = vpack.c.bf16 %v66_v41, %v65_v39 }
  0x31   :  { %v49_v46 = vld [vmem:[#allocation2 + $0x8] sm:$0xff]  ;;  %v660_v48 = vpack.c.bf16 %v98_v43, %v97_v42  ;;  %v67_v49 = vld [vmem:[#allocation4 + $0x50] sm:$0xff]  ;;  %v68_v50 = vld [vmem:[#allocation4 + $0x58] sm:$0xff]  ;;  %v635_v51 = vpack.c.bf16 %v84_v45, %v83_v44 }
  0x32   :  { %626 = vmatpush3.bf16.msra.mxu0 %v625_v28  ;;  %v99_v52 = vld [vmem:[#allocation4 + $0x150] sm:$0xff]  ;;  %v100_v53 = vld [vmem:[#allocation4 + $0x158] sm:$0xff]  ;;  %v85_v55 = vld [vmem:[#allocation4 + $0xe0] sm:$0xff]  ;;  %181 = vmatprep.mubr.f32.mxu0 %v49_v46  ;;  %v637_v57 = vpack.c.bf16 %v68_v50, %v67_v49 }
  0x33   :  { %655 = vmatpush1.bf16.msra.mxu1 %v654_v29  ;;  %628 = vmatprep.subr.bf16.mxu0 %v627_v31  ;;  %v51_v54 = vld [vmem:[#allocation2 + $0x18] sm:$0xff]  ;;  %v86_v56 = vld [vmem:[#allocation4 + $0xe8] sm:$0xff]  ;;  %v663_v58 = vpack.c.bf16 %v100_v53, %v99_v52  ;;  %v69_v59 = vld [vmem:[#allocation4 + $0x60] sm:$0xff] }
  0x34   :  { %656 = vmatprep.subr.bf16.mxu1 %v797_v0  ;;  %469 = vmatprep.mubr.msk.f32.mxu1 %vm110_vm0, %v51_v54  ;;  %v639_v60 = vpack.c.bf16 %v86_v56, %v85_v55  ;;  %v70_v61 = vld [vmem:[#allocation4 + $0x68] sm:$0xff]  ;;  %v101_v62 = vld [vmem:[#allocation4 + $0x160] sm:$0xff]  ;;  %v87_v1 = vld [vmem:[#allocation4 + $0xf0] sm:$0xff] }
  0x35   :  { %v102_v63 = vld [vmem:[#allocation4 + $0x168] sm:$0xff]  ;;  %v88_v2 = vld [vmem:[#allocation4 + $0xf8] sm:$0xff]  ;;  %v641_v3 = vpack.c.bf16 %v70_v61, %v69_v59  ;;  %v71_v5 = vld [vmem:[#allocation4 + $0x70] sm:$0xff] }
  0x36   :  { %630 = vmatpush3.bf16.msra.mxu0 %v629_v37  ;;  %v666_v4 = vpack.c.bf16 %v102_v63, %v101_v62  ;;  %v643_v6 = vpack.c.bf16 %v88_v2, %v87_v1  ;;  %v72_v7 = vld [vmem:[#allocation4 + $0x78] sm:$0xff]  ;;  %v103_v8 = vld [vmem:[#allocation4 + $0x170] sm:$0xff]  ;;  %v269_v10 = vld [vmem:[%s972_s2] sm:$0xff]  ;;  %v106_v1 = vlaneseq }
  0x37   :  { %658 = vmatpush1.bf16.msra.mxu1 %v657_v38  ;;  %632 = vmatprep.subr.bf16.mxu0 %v631_v40  ;;  %v104_v9 = vld [vmem:[#allocation4 + $0x178] sm:$0xff]  ;;  %v270_v11 = vld [vmem:[%s972_s2 + $0x8] sm:$0xff]  ;;  %v645_v12 = vpack.c.bf16 %v72_v7, %v71_v5  ;;  %v271_v15 = vld [vmem:[%s972_s2 + $0x10] sm:$0xff] }
  0x38   :  { %659 = vmatprep.subr.bf16.mxu1 %v797_v0  ;;  %v669_v13 = vpack.c.bf16 %v104_v9, %v103_v8  ;;  %v671_v14 = vpack.c.bf16 %v270_v11, %v269_v10  ;;  %v272_v16 = vld [vmem:[%s972_s2 + $0x18] sm:$0xff]  ;;  %v48_v17 = vld [vmem:[#allocation2] sm:$0xff]  ;;  %v53_v19 = vld [vmem:[#allocation2 + $0x28] sm:$0xff]  ;;  %v107_v2 = vshrl.u32 %v106_v1, 7 }
  0x39   :  { %v105_v20 = vld [vmem:[#allocation4 + $0x180] sm:$0xff]  ;;  %v50_v21 = vld [vmem:[#allocation2 + $0x10] sm:$0xff]  ;;  %v675_v22 = vpack.c.bf16 %v272_v16, %v271_v15  ;;  %v274_v24 = vld [vmem:[%s972_s2 + $0x28] sm:$0xff] }
  0x3a   :  { %634 = vmatpush3.bf16.msra.mxu0 %v633_v47  ;;  %v273_v23 = vld [vmem:[%s972_s2 + $0x20] sm:$0xff]  ;;  %v54_v26 = vld [vmem:[#allocation2 + $0x30] sm:$0xff]  ;;  %v276_v29 = vld [vmem:[%s972_s2 + $0x38] sm:$0xff] }
  0x3b   :  { %661 = vmatpush1.bf16.msra.mxu1 %v660_v48  ;;  %636 = vmatprep.subr.bf16.mxu0 %v635_v51  ;;  %v52_v25 = vld [vmem:[#allocation2 + $0x20] sm:$0xff]  ;;  %v679_v27 = vpack.c.bf16 %v274_v24, %v273_v23  ;;  %v275_v28 = vld [vmem:[%s972_s2 + $0x30] sm:$0xff]  ;;  %v278_v32 = vld [vmem:[%s972_s2 + $0x48] sm:$0xff]  ;;  %v287_v24 = vsub.s32 1, %v107_v2 }
  0x3c   :  { %662 = vmatprep.subr.bf16.mxu1 %v797_v0  ;;  %v683_v30 = vpack.c.bf16 %v276_v29, %v275_v28  ;;  %v277_v31 = vld [vmem:[%s972_s2 + $0x40] sm:$0xff]  ;;  %v279_v34 = vld [vmem:[%s972_s2 + $0x50] sm:$0xff]  ;;  %v280_v35 = vld [vmem:[%s972_s2 + $0x58] sm:$0xff] }
  0x3d   :  { %v687_v33 = vpack.c.bf16 %v278_v32, %v277_v31  ;;  %v691_v36 = vpack.c.bf16 %v280_v35, %v279_v34  ;;  %v281_v37 = vld [vmem:[%s972_s2 + $0x60] sm:$0xff]  ;;  %v282_v38 = vld [vmem:[%s972_s2 + $0x68] sm:$0xff]  ;;  %v283_v40 = vld [vmem:[%s972_s2 + $0x70] sm:$0xff]  ;;  %v384_v32 = vsub.s32 2, %v107_v2 }
  0x3e   :  { %638 = vmatpush3.bf16.msra.mxu0 %v637_v57  ;;  %v695_v39 = vpack.c.bf16 %v282_v38, %v281_v37  ;;  %v284_v41 = vld [vmem:[%s972_s2 + $0x78] sm:$0xff]  ;;  %v366_v43 = vld [vmem:[%s973_s3] sm:$0xff]  ;;  %v367_v44 = vld [vmem:[%s973_s3 + $0x8] sm:$0xff] }
  0x3f   :  { %664 = vmatpush1.bf16.msra.mxu1 %v663_v58  ;;  %640 = vmatprep.subr.bf16.mxu0 %v639_v60  ;;  %v699_v42 = vpack.c.bf16 %v284_v41, %v283_v40  ;;  %v368_v45 = vld [vmem:[%s973_s3 + $0x10] sm:$0xff]  ;;  %v703_v46 = vpack.c.bf16 %v367_v44, %v366_v43  ;;  %v369_v47 = vld [vmem:[%s973_s3 + $0x18] sm:$0xff]  ;;  %v370_v49 = vld [vmem:[%s973_s3 + $0x20] sm:$0xff] }
  0x40   :  { %665 = vmatprep.subr.bf16.mxu1 %v797_v0  ;;  %v707_v48 = vpack.c.bf16 %v369_v47, %v368_v45  ;;  %v371_v50 = vld [vmem:[%s973_s3 + $0x28] sm:$0xff]  ;;  %v372_v52 = vld [vmem:[%s973_s3 + $0x30] sm:$0xff]  ;;  %v373_v53 = vld [vmem:[%s973_s3 + $0x38] sm:$0xff] }
  0x41   :  { %v711_v51 = vpack.c.bf16 %v371_v50, %v370_v49  ;;  %v715_v54 = vpack.c.bf16 %v373_v53, %v372_v52  ;;  %v374_v55 = vld [vmem:[%s973_s3 + $0x40] sm:$0xff]  ;;  %v375_v56 = vld [vmem:[%s973_s3 + $0x48] sm:$0xff]  ;;  %v376_v58 = vld [vmem:[%s973_s3 + $0x50] sm:$0xff] }
  0x42   :  { %642 = vmatpush3.bf16.msra.mxu0 %v641_v3  ;;  %v719_v57 = vpack.c.bf16 %v375_v56, %v374_v55  ;;  %v377_v59 = vld [vmem:[%s973_s3 + $0x58] sm:$0xff]  ;;  %v378_v61 = vld [vmem:[%s973_s3 + $0x60] sm:$0xff]  ;;  %v379_v62 = vld [vmem:[%s973_s3 + $0x68] sm:$0xff]  ;;  %v108_v3 = vsub.s32 0, %v107_v2 }
  0x43   :  { %667 = vmatpush1.bf16.msra.mxu1 %v666_v4  ;;  %644 = vmatprep.subr.bf16.mxu0 %v643_v6  ;;  %v723_v60 = vpack.c.bf16 %v377_v59, %v376_v58  ;;  %v727_v63 = vpack.c.bf16 %v379_v62, %v378_v61  ;;  %v56_v4 = vld [vmem:[%s974_s4] sm:$0x7] }
  0x44   :  { %668 = vmatprep.subr.bf16.mxu1 %v797_v0  ;;  %v55_v0 = vld [vmem:[#allocation2 + $0x38] sm:$0xff]  ;;  %v109_v6 = vrot.slane %v56_v4, %v108_v3 }
  0x46   :  { %646 = vmatpush3.bf16.msra.mxu0 %v645_v12 }
  0x47   :  { %670 = vmatpush1.bf16.msra.mxu1 %v669_v13  ;;  %672 = vmatprep.subr.bf16.mxu0 %v671_v14 }
  0x48   :  { %224 = vmatprep.subr.mxu1 %v798_v18 }
  0x49   :  { %182 = vmatmul.mubr.f32.vlgmr.msra.gmra.mrb[0].mxu0 %v48_v17 }
  0x4a   :  { %186 = vmatprep.mubr.f32.mxu0 %v53_v19  ;;  %674 = vmatpush3.bf16.msra.mxu0 %v671_v14 }
  0x4b   :  { %225 = vmatpush1.msra.mxu1 %v105_v20  ;;  %676 = vmatprep.subr.bf16.mxu0 %v675_v22 }
  0x4c   :  { %257 = vmatmul.mubr.f32.vlgmr.msra.gmra.mrb[0].mxu1 %v50_v21  ;;  %704 = vmatprep.subr.bf16.mxu1 %v703_v46 }
  0x4d   :  { %470 = vmatprep.mubr.msk.f32.mxu1 %vm110_vm0, %v55_v0  ;;  %187 = vmatmul.mubr.f32.gmra.mrb[2].mxu0 %v52_v25  ;;  %v381_v0 = vld [vmem:[%s973_s3 + $0x78] sm:$0xff]  ;;  %v288_v25 = vrot.slane %v56_v4, %v287_v24 }
  0x4e   :  { %678 = vmatpush3.bf16.msra.mxu0 %v675_v22  ;;  %706 = vmatpush3.bf16.msra.mxu1 %v703_v46  ;;  %v380_v22 = vld [vmem:[%s973_s3 + $0x70] sm:$0xff] }
  0x4f   :  { %680 = vmatprep.subr.bf16.mxu0 %v679_v27  ;;  %708 = vmatprep.subr.bf16.mxu1 %v707_v48  ;;  %v731_v23 = vpack.c.bf16 %v381_v0, %v380_v22 }
  0x50   :  { %262 = vmatmul.mubr.f32.gmra.mrb[2].mxu1 %v54_v26 }
  0x52   :  { %682 = vmatpush3.bf16.msra.mxu0 %v679_v27  ;;  %710 = vmatpush3.bf16.msra.mxu1 %v707_v48 }
  0x53   :  { %684 = vmatprep.subr.bf16.mxu0 %v683_v30  ;;  %712 = vmatprep.subr.bf16.mxu1 %v711_v51 }
  0x56   :  { %686 = vmatpush3.bf16.msra.mxu0 %v683_v30  ;;  %714 = vmatpush3.bf16.msra.mxu1 %v711_v51 }
  0x57   :  { %688 = vmatprep.subr.bf16.mxu0 %v687_v33  ;;  %716 = vmatprep.subr.bf16.mxu1 %v715_v54 }
  0x5a   :  { %690 = vmatpush3.bf16.msra.mxu0 %v687_v33  ;;  %718 = vmatpush3.bf16.msra.mxu1 %v715_v54  ;;  %v385_v33 = vrot.slane %v56_v4, %v384_v32 }
  0x5b   :  { %692 = vmatprep.subr.bf16.mxu0 %v691_v36  ;;  %720 = vmatprep.subr.bf16.mxu1 %v719_v57 }
  0x5e   :  { %694 = vmatpush3.bf16.msra.mxu0 %v691_v36  ;;  %722 = vmatpush3.bf16.msra.mxu1 %v719_v57 }
  0x5f   :  { %696 = vmatprep.subr.bf16.mxu0 %v695_v39  ;;  %724 = vmatprep.subr.bf16.mxu1 %v723_v60 }
  0x62   :  { %698 = vmatpush3.bf16.msra.mxu0 %v695_v39  ;;  %726 = vmatpush3.bf16.msra.mxu1 %v723_v60 }
  0x63   :  { %700 = vmatprep.subr.bf16.mxu0 %v699_v42  ;;  %728 = vmatprep.subr.bf16.mxu1 %v727_v63 }
  0x66   :  { %702 = vmatpush3.bf16.msra.mxu0 %v699_v42  ;;  %730 = vmatpush3.bf16.msra.mxu1 %v727_v63 }
  0x67   :  { %732 = vmatprep.subr.bf16.mxu1 %v731_v23 }
  0x6a   :  { %734 = vmatpush3.bf16.msra.mxu1 %v731_v23 }
 0x11c   :  { %v503_v5 = vpop.f32.mrb[0].mxu0 }
 0x11d   :  { %v504_v7 = vpop.f32.mrb[1].mxu0 }
 0x11e   :  { %v505_v8 = vadd.f32 %v504_v7, %v503_v5 }
 0x11f   :  { %v258_v9 = vpop.f32.mrb[0].mxu1 }
 0x120   :  { %v260_v10 = vpop.f32.mrb[1].mxu1  ;;  %v506_v11 = vpop.f32.mrb[2].mxu0  ;;  %v184_v12 = vadd.f32 %v505_v8, %v109_v6 }
 0x121   :  { %v507_v13 = vpop.f32.mrb[3].mxu0 }
 0x122   :  { %v259_v14 = vadd.f32 %v258_v9, %v184_v12  ;;  %v508_v15 = vadd.f32 %v507_v13, %v506_v11 }
 0x123   :  { %v263_v16 = vpop.f32.mrb[2].mxu1 }
 0x124   :  { %v265_v17 = vpop.f32.mrb[3].mxu1  ;;  %v267_v18 = vmax.f32 %v259_v14, 0.0  ;;  %v189_v19 = vadd.f32 %v508_v15, %v109_v6 }
 0x126   :  { %v264_v20 = vadd.f32 %v263_v16, %v189_v19  ;;  %577 = vmatprep.mubr.f32.mxu0 %v267_v18 }
 0x128   :  { %v268_v21 = vmax.f32 %v264_v20, 0.0 }
 0x12a   :  { %578 = vmatmul.mubr.f32.vlgmr.msra.gmra.mrb[4].mxu0 %v268_v21 }
 0x1fd   :  { %v579_v26 = vpop.f32.mrb[4].mxu0 }
 0x1fe   :  { %v361_v27 = vadd.f32 %v579_v26, %v288_v25  ;;  %v355_v28 = vpop.f32.mrb[5].mxu0 }
 0x1ff   :  { %v356_v29 = vadd.f32 %v355_v28, %v288_v25 }
 0x200   :  { %v365_v31 = vmax.f32 %v361_v27, 0.0 }
 0x201   :  { %v364_v30 = vmax.f32 %v356_v29, 0.0 }
 0x203   :  { %612 = vmatprep.mubr.f32.mxu1 %v364_v30 }
 0x204   :  { %613 = vmatmul.mubr.f32.vlgmr.msra.gmra.mrb[4].mxu1 %v365_v31 }
 0x2d7   :  { %v614_v34 = vpop.f32.mrb[4].mxu1 }
 0x2d8   :  { %v458_v35 = vadd.f32 %v614_v34, %v385_v33  ;;  %v452_v36 = vpop.f32.mrb[5].mxu1 }
 0x2d9   :  { %v453_v37 = vadd.f32 %v452_v36, %v385_v33 }
 0x2da   :  { %462 = vst.msk [vmem:[%s975_s5 + $0x8] sm:$0xff] %vm110_vm0, %v458_v35 }
 0x2db   :  { %461 = vst.msk [vmem:[%s975_s5] sm:$0xff] %vm110_vm0, %v453_v37 }
 0x2dc   :  { %467 = vsyncpa [#allocation3], 1 }
 0x2dd   :  { %468 = vsyncpa [#allocation5], 1 }

</bundles_post_ra>
